<compile_context>
chip_gen: v7x
topology: tpu7x:2x2x1
jax: 0.10.0
libtpu: 0.0.40
codegen_flags: <defaults>
</compile_context>

<pallas_src>
import functools

import jax
import jax.numpy as jnp
from jax.experimental import pallas as pl
from jax.experimental.pallas import tpu as pltpu


def _mlp_kernel(S, H, n_hid,
                emb_ref, w_in_ref, b_in_ref,
                w_hid_ref, b_hid_ref,
                w_out_ref, b_out_ref, out_ref):
    """Entire forward pass (all sequence positions) in one invocation."""
    x = emb_ref[...]                                                  # (B, D) bf16

    # All S input layers at once: (B, D) @ (D, S*H) -> (B, S*H), f32 accum.
    y_all = jnp.dot(x, w_in_ref[...], preferred_element_type=jnp.float32)
    y_all = jnp.maximum(y_all + b_in_ref[...], 0.0)                   # bias(+BN) + ReLU

    cols = []
    for i in range(S):                                                # static unroll
        y = y_all[:, i * H:(i + 1) * H]                               # (B, H) f32
        for l in range(n_hid):                                        # static unroll
            idx = i * n_hid + l
            y = jnp.dot(y.astype(jnp.bfloat16), w_hid_ref[idx],
                        preferred_element_type=jnp.float32)           # (B, H) f32
            y = jnp.maximum(y + b_hid_ref[idx], 0.0)
        # Linear(H, 1): elementwise mul + lane reduction (keep off the MXU).
        cols.append(jnp.sum(y * w_out_ref[i], axis=-1, keepdims=True))  # (B, 1)

    logits = jnp.concatenate(cols, axis=-1) + b_out_ref[...]          # (B, S)
    out_ref[...] = jax.nn.sigmoid(logits)                             # single store


def prepare_params(p):
    """Fold eval-mode BN into Linear weights/biases and pack for the kernel."""
    S, D, H = p["w_in"].shape
    n_hid = p["w_hid"].shape[1]

    w_in = p["w_in"] * p["s_in"]                        # (S, D, H)   column scale
    b_in = p["b_in"] * p["s_in"] + p["t_in"]            # (S, 1, H)
    w_hid = p["w_hid"] * p["s_hid"]                     # (S, n_hid, H, H)
    b_hid = p["b_hid"] * p["s_hid"] + p["t_hid"]        # (S, n_hid, 1, H)

    return {
        "embed": p["embed"].astype(jnp.bfloat16),                      # (2**S, D)
        "w_in": jnp.transpose(w_in, (1, 0, 2)).reshape(D, S * H)
                   .astype(jnp.bfloat16),                              # (D, S*H)
        "b_in": b_in.reshape(1, S * H).astype(jnp.float32),            # (1, S*H)
        "w_hid": w_hid.reshape(S * n_hid, H, H).astype(jnp.bfloat16),  # (S*n_hid,H,H)
        "b_hid": b_hid.reshape(S * n_hid, 1, H).astype(jnp.float32),   # (S*n_hid,1,H)
        "w_out": p["w_out"].astype(jnp.float32),                       # (S, 1, H)
        "b_out": p["b_out"].reshape(1, S).astype(jnp.float32),         # (1, S)
    }


@jax.jit
def st_binary_predictor_forward(x_idx, q):
    """x_idx: int32 (B,) indices in [0, 2**S).  Returns (B, S) probabilities."""
    emb = q["embed"][x_idx]                          # embedding gather (glue), (B, D)
    S, _, H = q["w_out"].shape
    n_hid = q["w_hid"].shape[0] // S
    B = emb.shape[0]

    vmem = pl.BlockSpec(memory_space=pltpu.MemorySpace.VMEM)
    return pl.pallas_call(
        functools.partial(_mlp_kernel, S, H, n_hid),
        out_shape=jax.ShapeDtypeStruct((B, S), jnp.float32),
        in_specs=[vmem] * 7,
        out_specs=vmem,
    )(emb, q["w_in"], q["b_in"], q["w_hid"], q["b_hid"], q["w_out"], q["b_out"])


def init_params(key, *, seq_len, num_layers, input_dim, hidden_dim):
    n_hid = max(num_layers - 2, 0)
    eps = 1e-5
    ks = jax.random.split(key, 16)

    def bn_affine(kg, kb, km, kv, shape):
        gamma = 1.0 + 0.1 * jax.random.normal(kg, shape, jnp.float32)
        beta = 0.1 * jax.random.normal(kb, shape, jnp.float32)
        mean = 0.1 * jax.random.normal(km, shape, jnp.float32)
        var = 0.5 + jax.random.uniform(kv, shape, jnp.float32)
        scale = gamma / jnp.sqrt(var + eps)
        shift = beta - mean * scale
        return scale, shift

    s_in, t_in = bn_affine(ks[7], ks[8], ks[9], ks[10], (seq_len, 1, hidden_dim))
    s_hid, t_hid = bn_affine(ks[11], ks[12], ks[13], ks[14],
                             (seq_len, n_hid, 1, hidden_dim))

    return {
        "embed": jax.random.normal(ks[0], (2 ** seq_len, input_dim), jnp.float32),
        "w_in": jax.random.normal(ks[1], (seq_len, input_dim, hidden_dim),
                                  jnp.float32) / jnp.sqrt(input_dim),
        "b_in": 0.1 * jax.random.normal(ks[2], (seq_len, 1, hidden_dim), jnp.float32),
        "w_hid": jax.random.normal(ks[3], (seq_len, n_hid, hidden_dim, hidden_dim),
                                   jnp.float32) / jnp.sqrt(hidden_dim),
        "b_hid": 0.1 * jax.random.normal(ks[4], (seq_len, n_hid, 1, hidden_dim),
                                         jnp.float32),
        "w_out": jax.random.normal(ks[5], (seq_len, 1, hidden_dim),
                                   jnp.float32) / jnp.sqrt(hidden_dim),
        "b_out": 0.1 * jax.random.normal(ks[6], (seq_len,), jnp.float32),
        "s_in": s_in, "t_in": t_in, "s_hid": s_hid, "t_hid": t_hid,
    }


def reference_forward(x_idx, p):
    """Pure-JAX f32 reference with identical eval-mode semantics (BN unfolded)."""
    emb = p["embed"][x_idx]
    S = p["w_in"].shape[0]
    n_hid = p["w_hid"].shape[1]
    cols = []
    for i in range(S):
        y = emb @ p["w_in"][i] + p["b_in"][i]
        y = jnp.maximum(y * p["s_in"][i] + p["t_in"][i], 0.0)
        for l in range(n_hid):
            y = y @ p["w_hid"][i, l] + p["b_hid"][i, l]
            y = jnp.maximum(y * p["s_hid"][i, l] + p["t_hid"][i, l], 0.0)
        cols.append(jnp.sum(y * p["w_out"][i], axis=-1) + p["b_out"][i])
    return jax.nn.sigmoid(jnp.stack(cols, axis=1))


if __name__ == "__main__":
    # Small shapes consistent with the module: seq_len=4, num_layers=4,
    # input_dim=16, hidden_dim=128, batch=8.
    SEQ_LEN, NUM_LAYERS, INPUT_DIM, HIDDEN_DIM, BATCH = 4, 4, 16, 128, 8

    key = jax.random.PRNGKey(0)
    kp, kx = jax.random.split(key)
    params = init_params(kp, seq_len=SEQ_LEN, num_layers=NUM_LAYERS,
                         input_dim=INPUT_DIM, hidden_dim=HIDDEN_DIM)
    x = jax.random.randint(kx, (BATCH,), 0, 2 ** SEQ_LEN, dtype=jnp.int32)

    prepped = prepare_params(params)
    out = jax.block_until_ready(st_binary_predictor_forward(x, prepped))
    ref = jax.block_until_ready(reference_forward(x, params))

    assert out.shape == (BATCH, SEQ_LEN), out.shape
    # Tolerance accounts for bf16 matmul operands in the kernel (f32 accumulate)
    # vs. the all-f32 reference; sigmoid bounds the output error well below this.
    assert jnp.allclose(out, ref, atol=2e-2, rtol=2e-2), (
        f"max abs diff {jnp.max(jnp.abs(out - ref))}")

    print("KERNEL_OK")
</pallas_src>

<mosaic_0001>
module attributes {stable_mosaic.version = 11 : i64} {
  func.func @_mlp_kernel(%arg0: memref<8x16xbf16, #tpu.memory_space<vmem>>, %arg1: memref<16x512xbf16, #tpu.memory_space<vmem>>, %arg2: memref<1x512xf32, #tpu.memory_space<vmem>>, %arg3: memref<8x128x128xbf16, #tpu.memory_space<vmem>>, %arg4: memref<8x1x128xf32, #tpu.memory_space<vmem>>, %arg5: memref<4x1x128xf32, #tpu.memory_space<vmem>>, %arg6: memref<1x4xf32, #tpu.memory_space<vmem>>, %arg7: memref<8x4xf32, #tpu.memory_space<vmem>>) attributes {dimension_semantics = [], scalar_prefetch = 0 : i64, scratch_operands = 0 : i64, tpu.core_type = #tpu.core_type<tc>} {
    %c0 = arith.constant 0 : index
    %c0_0 = arith.constant 0 : index
    %0 = vector.load %arg0[%c0, %c0_0] : memref<8x16xbf16, #tpu.memory_space<vmem>>, vector<8x16xbf16>
    %c0_1 = arith.constant 0 : index
    %c0_2 = arith.constant 0 : index
    %1 = vector.load %arg1[%c0_1, %c0_2] : memref<16x512xbf16, #tpu.memory_space<vmem>>, vector<16x512xbf16>
    %cst = arith.constant dense<0.000000e+00> : vector<8x512xf32>
    %2 = tpu.matmul %0, %1, %cst {dimension_numbers = #tpu.dot_dimension_numbers<[1], [0], [0], [1], [0, 0, 1, 1], [], []>} : vector<8x16xbf16>, vector<16x512xbf16>, vector<8x512xf32> -> vector<8x512xf32>
    %c0_3 = arith.constant 0 : index
    %c0_4 = arith.constant 0 : index
    %3 = vector.load %arg2[%c0_3, %c0_4] : memref<1x512xf32, #tpu.memory_space<vmem>>, vector<1x512xf32>
    %4 = vector.broadcast %3 : vector<1x512xf32> to vector<8x512xf32>
    %5 = arith.addf %2, %4 : vector<8x512xf32>
    %cst_5 = arith.constant 0.000000e+00 : f32
    %6 = vector.broadcast %cst_5 : f32 to vector<8x512xf32>
    %7 = arith.maximumf %5, %6 : vector<8x512xf32>
    %8 = vector.extract_strided_slice %7 {offsets = [0, 0], sizes = [8, 128], strides = [1, 1]} : vector<8x512xf32> to vector<8x128xf32>
    %9 = arith.truncf %8 : vector<8x128xf32> to vector<8x128xbf16>
    %c0_6 = arith.constant 0 : index
    %c0_7 = arith.constant 0 : index
    %c0_8 = arith.constant 0 : index
    %10 = vector.load %arg3[%c0_6, %c0_7, %c0_8] : memref<8x128x128xbf16, #tpu.memory_space<vmem>>, vector<1x128x128xbf16>
    %11 = vector.shape_cast %10 : vector<1x128x128xbf16> to vector<128x128xbf16>
    %cst_9 = arith.constant dense<0.000000e+00> : vector<8x128xf32>
    %12 = tpu.matmul %9, %11, %cst_9 {dimension_numbers = #tpu.dot_dimension_numbers<[1], [0], [0], [1], [0, 0, 1, 1], [], []>} : vector<8x128xbf16>, vector<128x128xbf16>, vector<8x128xf32> -> vector<8x128xf32>
    %c0_10 = arith.constant 0 : index
    %c0_11 = arith.constant 0 : index
    %c0_12 = arith.constant 0 : index
    %13 = vector.load %arg4[%c0_10, %c0_11, %c0_12] : memref<8x1x128xf32, #tpu.memory_space<vmem>>, vector<1x1x128xf32>
    %14 = vector.shape_cast %13 : vector<1x1x128xf32> to vector<1x128xf32>
    %15 = vector.broadcast %14 : vector<1x128xf32> to vector<8x128xf32>
    %16 = arith.addf %12, %15 : vector<8x128xf32>
    %cst_13 = arith.constant 0.000000e+00 : f32
    %17 = vector.broadcast %cst_13 : f32 to vector<8x128xf32>
    %18 = arith.maximumf %16, %17 : vector<8x128xf32>
    %19 = arith.truncf %18 : vector<8x128xf32> to vector<8x128xbf16>
    %c1 = arith.constant 1 : index
    %c0_14 = arith.constant 0 : index
    %c0_15 = arith.constant 0 : index
    %20 = vector.load %arg3[%c1, %c0_14, %c0_15] : memref<8x128x128xbf16, #tpu.memory_space<vmem>>, vector<1x128x128xbf16>
    %21 = vector.shape_cast %20 : vector<1x128x128xbf16> to vector<128x128xbf16>
    %cst_16 = arith.constant dense<0.000000e+00> : vector<8x128xf32>
    %22 = tpu.matmul %19, %21, %cst_16 {dimension_numbers = #tpu.dot_dimension_numbers<[1], [0], [0], [1], [0, 0, 1, 1], [], []>} : vector<8x128xbf16>, vector<128x128xbf16>, vector<8x128xf32> -> vector<8x128xf32>
    %c1_17 = arith.constant 1 : index
    %c0_18 = arith.constant 0 : index
    %c0_19 = arith.constant 0 : index
    %23 = vector.load %arg4[%c1_17, %c0_18, %c0_19] : memref<8x1x128xf32, #tpu.memory_space<vmem>>, vector<1x1x128xf32>
    %24 = vector.shape_cast %23 : vector<1x1x128xf32> to vector<1x128xf32>
    %25 = vector.broadcast %24 : vector<1x128xf32> to vector<8x128xf32>
    %26 = arith.addf %22, %25 : vector<8x128xf32>
    %cst_20 = arith.constant 0.000000e+00 : f32
    %27 = vector.broadcast %cst_20 : f32 to vector<8x128xf32>
    %28 = arith.maximumf %26, %27 : vector<8x128xf32>
    %c0_21 = arith.constant 0 : index
    %c0_22 = arith.constant 0 : index
    %c0_23 = arith.constant 0 : index
    %29 = vector.load %arg5[%c0_21, %c0_22, %c0_23] : memref<4x1x128xf32, #tpu.memory_space<vmem>>, vector<1x1x128xf32>
    %30 = vector.shape_cast %29 : vector<1x1x128xf32> to vector<1x128xf32>
    %31 = vector.broadcast %30 : vector<1x128xf32> to vector<8x128xf32>
    %32 = arith.mulf %28, %31 : vector<8x128xf32>
    %cst_24 = arith.constant dense<0.000000e+00> : vector<8xf32>
    %33 = vector.multi_reduction <add>, %32, %cst_24 [1] : vector<8x128xf32> to vector<8xf32>
    %34 = vector.shape_cast %33 : vector<8xf32> to vector<8x1xf32>
    %35 = vector.extract_strided_slice %7 {offsets = [0, 128], sizes = [8, 128], strides = [1, 1]} : vector<8x512xf32> to vector<8x128xf32>
    %36 = arith.truncf %35 : vector<8x128xf32> to vector<8x128xbf16>
    %c2 = arith.constant 2 : index
    %c0_25 = arith.constant 0 : index
    %c0_26 = arith.constant 0 : index
    %37 = vector.load %arg3[%c2, %c0_25, %c0_26] : memref<8x128x128xbf16, #tpu.memory_space<vmem>>, vector<1x128x128xbf16>
    %38 = vector.shape_cast %37 : vector<1x128x128xbf16> to vector<128x128xbf16>
    %cst_27 = arith.constant dense<0.000000e+00> : vector<8x128xf32>
    %39 = tpu.matmul %36, %38, %cst_27 {dimension_numbers = #tpu.dot_dimension_numbers<[1], [0], [0], [1], [0, 0, 1, 1], [], []>} : vector<8x128xbf16>, vector<128x128xbf16>, vector<8x128xf32> -> vector<8x128xf32>
    %c2_28 = arith.constant 2 : index
    %c0_29 = arith.constant 0 : index
    %c0_30 = arith.constant 0 : index
    %40 = vector.load %arg4[%c2_28, %c0_29, %c0_30] : memref<8x1x128xf32, #tpu.memory_space<vmem>>, vector<1x1x128xf32>
    %41 = vector.shape_cast %40 : vector<1x1x128xf32> to vector<1x128xf32>
    %42 = vector.broadcast %41 : vector<1x128xf32> to vector<8x128xf32>
    %43 = arith.addf %39, %42 : vector<8x128xf32>
    %cst_31 = arith.constant 0.000000e+00 : f32
    %44 = vector.broadcast %cst_31 : f32 to vector<8x128xf32>
    %45 = arith.maximumf %43, %44 : vector<8x128xf32>
    %46 = arith.truncf %45 : vector<8x128xf32> to vector<8x128xbf16>
    %c3 = arith.constant 3 : index
    %c0_32 = arith.constant 0 : index
    %c0_33 = arith.constant 0 : index
    %47 = vector.load %arg3[%c3, %c0_32, %c0_33] : memref<8x128x128xbf16, #tpu.memory_space<vmem>>, vector<1x128x128xbf16>
    %48 = vector.shape_cast %47 : vector<1x128x128xbf16> to vector<128x128xbf16>
    %cst_34 = arith.constant dense<0.000000e+00> : vector<8x128xf32>
    %49 = tpu.matmul %46, %48, %cst_34 {dimension_numbers = #tpu.dot_dimension_numbers<[1], [0], [0], [1], [0, 0, 1, 1], [], []>} : vector<8x128xbf16>, vector<128x128xbf16>, vector<8x128xf32> -> vector<8x128xf32>
    %c3_35 = arith.constant 3 : index
    %c0_36 = arith.constant 0 : index
    %c0_37 = arith.constant 0 : index
    %50 = vector.load %arg4[%c3_35, %c0_36, %c0_37] : memref<8x1x128xf32, #tpu.memory_space<vmem>>, vector<1x1x128xf32>
    %51 = vector.shape_cast %50 : vector<1x1x128xf32> to vector<1x128xf32>
    %52 = vector.broadcast %51 : vector<1x128xf32> to vector<8x128xf32>
    %53 = arith.addf %49, %52 : vector<8x128xf32>
    %cst_38 = arith.constant 0.000000e+00 : f32
    %54 = vector.broadcast %cst_38 : f32 to vector<8x128xf32>
    %55 = arith.maximumf %53, %54 : vector<8x128xf32>
    %c1_39 = arith.constant 1 : index
    %c0_40 = arith.constant 0 : index
    %c0_41 = arith.constant 0 : index
    %56 = vector.load %arg5[%c1_39, %c0_40, %c0_41] : memref<4x1x128xf32, #tpu.memory_space<vmem>>, vector<1x1x128xf32>
    %57 = vector.shape_cast %56 : vector<1x1x128xf32> to vector<1x128xf32>
    %58 = vector.broadcast %57 : vector<1x128xf32> to vector<8x128xf32>
    %59 = arith.mulf %55, %58 : vector<8x128xf32>
    %cst_42 = arith.constant dense<0.000000e+00> : vector<8xf32>
    %60 = vector.multi_reduction <add>, %59, %cst_42 [1] : vector<8x128xf32> to vector<8xf32>
    %61 = vector.shape_cast %60 : vector<8xf32> to vector<8x1xf32>
    %62 = vector.extract_strided_slice %7 {offsets = [0, 256], sizes = [8, 128], strides = [1, 1]} : vector<8x512xf32> to vector<8x128xf32>
    %63 = arith.truncf %62 : vector<8x128xf32> to vector<8x128xbf16>
    %c4 = arith.constant 4 : index
    %c0_43 = arith.constant 0 : index
    %c0_44 = arith.constant 0 : index
    %64 = vector.load %arg3[%c4, %c0_43, %c0_44] : memref<8x128x128xbf16, #tpu.memory_space<vmem>>, vector<1x128x128xbf16>
    %65 = vector.shape_cast %64 : vector<1x128x128xbf16> to vector<128x128xbf16>
    %cst_45 = arith.constant dense<0.000000e+00> : vector<8x128xf32>
    %66 = tpu.matmul %63, %65, %cst_45 {dimension_numbers = #tpu.dot_dimension_numbers<[1], [0], [0], [1], [0, 0, 1, 1], [], []>} : vector<8x128xbf16>, vector<128x128xbf16>, vector<8x128xf32> -> vector<8x128xf32>
    %c4_46 = arith.constant 4 : index
    %c0_47 = arith.constant 0 : index
    %c0_48 = arith.constant 0 : index
    %67 = vector.load %arg4[%c4_46, %c0_47, %c0_48] : memref<8x1x128xf32, #tpu.memory_space<vmem>>, vector<1x1x128xf32>
    %68 = vector.shape_cast %67 : vector<1x1x128xf32> to vector<1x128xf32>
    %69 = vector.broadcast %68 : vector<1x128xf32> to vector<8x128xf32>
    %70 = arith.addf %66, %69 : vector<8x128xf32>
    %cst_49 = arith.constant 0.000000e+00 : f32
    %71 = vector.broadcast %cst_49 : f32 to vector<8x128xf32>
    %72 = arith.maximumf %70, %71 : vector<8x128xf32>
    %73 = arith.truncf %72 : vector<8x128xf32> to vector<8x128xbf16>
    %c5 = arith.constant 5 : index
    %c0_50 = arith.constant 0 : index
    %c0_51 = arith.constant 0 : index
    %74 = vector.load %arg3[%c5, %c0_50, %c0_51] : memref<8x128x128xbf16, #tpu.memory_space<vmem>>, vector<1x128x128xbf16>
    %75 = vector.shape_cast %74 : vector<1x128x128xbf16> to vector<128x128xbf16>
    %cst_52 = arith.constant dense<0.000000e+00> : vector<8x128xf32>
    %76 = tpu.matmul %73, %75, %cst_52 {dimension_numbers = #tpu.dot_dimension_numbers<[1], [0], [0], [1], [0, 0, 1, 1], [], []>} : vector<8x128xbf16>, vector<128x128xbf16>, vector<8x128xf32> -> vector<8x128xf32>
    %c5_53 = arith.constant 5 : index
    %c0_54 = arith.constant 0 : index
    %c0_55 = arith.constant 0 : index
    %77 = vector.load %arg4[%c5_53, %c0_54, %c0_55] : memref<8x1x128xf32, #tpu.memory_space<vmem>>, vector<1x1x128xf32>
    %78 = vector.shape_cast %77 : vector<1x1x128xf32> to vector<1x128xf32>
    %79 = vector.broadcast %78 : vector<1x128xf32> to vector<8x128xf32>
    %80 = arith.addf %76, %79 : vector<8x128xf32>
    %cst_56 = arith.constant 0.000000e+00 : f32
    %81 = vector.broadcast %cst_56 : f32 to vector<8x128xf32>
    %82 = arith.maximumf %80, %81 : vector<8x128xf32>
    %c2_57 = arith.constant 2 : index
    %c0_58 = arith.constant 0 : index
    %c0_59 = arith.constant 0 : index
    %83 = vector.load %arg5[%c2_57, %c0_58, %c0_59] : memref<4x1x128xf32, #tpu.memory_space<vmem>>, vector<1x1x128xf32>
    %84 = vector.shape_cast %83 : vector<1x1x128xf32> to vector<1x128xf32>
    %85 = vector.broadcast %84 : vector<1x128xf32> to vector<8x128xf32>
    %86 = arith.mulf %82, %85 : vector<8x128xf32>
    %cst_60 = arith.constant dense<0.000000e+00> : vector<8xf32>
    %87 = vector.multi_reduction <add>, %86, %cst_60 [1] : vector<8x128xf32> to vector<8xf32>
    %88 = vector.shape_cast %87 : vector<8xf32> to vector<8x1xf32>
    %89 = vector.extract_strided_slice %7 {offsets = [0, 384], sizes = [8, 128], strides = [1, 1]} : vector<8x512xf32> to vector<8x128xf32>
    %90 = arith.truncf %89 : vector<8x128xf32> to vector<8x128xbf16>
    %c6 = arith.constant 6 : index
    %c0_61 = arith.constant 0 : index
    %c0_62 = arith.constant 0 : index
    %91 = vector.load %arg3[%c6, %c0_61, %c0_62] : memref<8x128x128xbf16, #tpu.memory_space<vmem>>, vector<1x128x128xbf16>
    %92 = vector.shape_cast %91 : vector<1x128x128xbf16> to vector<128x128xbf16>
    %cst_63 = arith.constant dense<0.000000e+00> : vector<8x128xf32>
    %93 = tpu.matmul %90, %92, %cst_63 {dimension_numbers = #tpu.dot_dimension_numbers<[1], [0], [0], [1], [0, 0, 1, 1], [], []>} : vector<8x128xbf16>, vector<128x128xbf16>, vector<8x128xf32> -> vector<8x128xf32>
    %c6_64 = arith.constant 6 : index
    %c0_65 = arith.constant 0 : index
    %c0_66 = arith.constant 0 : index
    %94 = vector.load %arg4[%c6_64, %c0_65, %c0_66] : memref<8x1x128xf32, #tpu.memory_space<vmem>>, vector<1x1x128xf32>
    %95 = vector.shape_cast %94 : vector<1x1x128xf32> to vector<1x128xf32>
    %96 = vector.broadcast %95 : vector<1x128xf32> to vector<8x128xf32>
    %97 = arith.addf %93, %96 : vector<8x128xf32>
    %cst_67 = arith.constant 0.000000e+00 : f32
    %98 = vector.broadcast %cst_67 : f32 to vector<8x128xf32>
    %99 = arith.maximumf %97, %98 : vector<8x128xf32>
    %100 = arith.truncf %99 : vector<8x128xf32> to vector<8x128xbf16>
    %c7 = arith.constant 7 : index
    %c0_68 = arith.constant 0 : index
    %c0_69 = arith.constant 0 : index
    %101 = vector.load %arg3[%c7, %c0_68, %c0_69] : memref<8x128x128xbf16, #tpu.memory_space<vmem>>, vector<1x128x128xbf16>
    %102 = vector.shape_cast %101 : vector<1x128x128xbf16> to vector<128x128xbf16>
    %cst_70 = arith.constant dense<0.000000e+00> : vector<8x128xf32>
    %103 = tpu.matmul %100, %102, %cst_70 {dimension_numbers = #tpu.dot_dimension_numbers<[1], [0], [0], [1], [0, 0, 1, 1], [], []>} : vector<8x128xbf16>, vector<128x128xbf16>, vector<8x128xf32> -> vector<8x128xf32>
    %c7_71 = arith.constant 7 : index
    %c0_72 = arith.constant 0 : index
    %c0_73 = arith.constant 0 : index
    %104 = vector.load %arg4[%c7_71, %c0_72, %c0_73] : memref<8x1x128xf32, #tpu.memory_space<vmem>>, vector<1x1x128xf32>
    %105 = vector.shape_cast %104 : vector<1x1x128xf32> to vector<1x128xf32>
    %106 = vector.broadcast %105 : vector<1x128xf32> to vector<8x128xf32>
    %107 = arith.addf %103, %106 : vector<8x128xf32>
    %cst_74 = arith.constant 0.000000e+00 : f32
    %108 = vector.broadcast %cst_74 : f32 to vector<8x128xf32>
    %109 = arith.maximumf %107, %108 : vector<8x128xf32>
    %c3_75 = arith.constant 3 : index
    %c0_76 = arith.constant 0 : index
    %c0_77 = arith.constant 0 : index
    %110 = vector.load %arg5[%c3_75, %c0_76, %c0_77] : memref<4x1x128xf32, #tpu.memory_space<vmem>>, vector<1x1x128xf32>
    %111 = vector.shape_cast %110 : vector<1x1x128xf32> to vector<1x128xf32>
    %112 = vector.broadcast %111 : vector<1x128xf32> to vector<8x128xf32>
    %113 = arith.mulf %109, %112 : vector<8x128xf32>
    %cst_78 = arith.constant dense<0.000000e+00> : vector<8xf32>
    %114 = vector.multi_reduction <add>, %113, %cst_78 [1] : vector<8x128xf32> to vector<8xf32>
    %115 = vector.shape_cast %114 : vector<8xf32> to vector<8x1xf32>
    %116 = tpu.concatenate %34, %61, %88, %115 in 1 : vector<8x1xf32>, vector<8x1xf32>, vector<8x1xf32>, vector<8x1xf32> -> vector<8x4xf32>
    %c0_79 = arith.constant 0 : index
    %c0_80 = arith.constant 0 : index
    %117 = vector.load %arg6[%c0_79, %c0_80] : memref<1x4xf32, #tpu.memory_space<vmem>>, vector<1x4xf32>
    %118 = vector.broadcast %117 : vector<1x4xf32> to vector<8x4xf32>
    %119 = arith.addf %116, %118 : vector<8x4xf32>
    %120 = arith.negf %119 : vector<8x4xf32>
    %121 = math.exp %120 : vector<8x4xf32>
    %cst_81 = arith.constant 1.000000e+00 : f32
    %122 = vector.broadcast %cst_81 : f32 to vector<8x4xf32>
    %123 = arith.addf %122, %121 : vector<8x4xf32>
    %124 = arith.divf %122, %123 : vector<8x4xf32>
    %c0_82 = arith.constant 0 : index
    %c0_83 = arith.constant 0 : index
    %125 = vector.load %arg7[%c0_82, %c0_83] : memref<8x4xf32, #tpu.memory_space<vmem>>, vector<8x4xf32>
    tpu.vector_store %arg7[%c0_82, %c0_83], %124 {strides = array<i32>} : memref<8x4xf32, #tpu.memory_space<vmem>>, vector<8x4xf32>,
    return
  }
}

</mosaic_0001>

<bundles_post_ra>
// kernel: st_binary_predictor_forward.1
= control target key start
LH: loop header
LB: loop body
LE: loop exit
PB: predicated region body
PF: predicated region fallthrough
CT: control target
= control target key end

     0   :  { %12 = vsyncpa [#allocation3], 0  ;;  %s1596_s24 = smov [#allocation2]   ;;  %s1809_s0 = inlined_call_operand.vmem [shape: bf16[8,16], index: 0, kind: input, shape index: {}]   ;;  %s1810_s1 = inlined_call_operand.vmem [shape: bf16[16,512], index: 1, kind: input, shape index: {}]   ;;  %s1811_s2 = inlined_call_operand.vmem [shape: f32[1,512], index: 2, kind: input, shape index: {}]   ;;  %s1812_s3 = inlined_call_operand.hbm [shape: bf16[8,128,128], index: 3, kind: input, shape index: {}]   ;;  %s1813_s4 = inlined_call_operand.vmem [shape: f32[8,1,128], index: 4, kind: input, shape index: {}]   ;;  %s1814_s5 = inlined_call_operand.vmem [shape: f32[4,1,128], index: 5, kind: input, shape index: {}]   ;;  %s1815_s6 = inlined_call_operand.vmem [shape: f32[1,4], index: 6, kind: input, shape index: {}]   ;;  %s1816_s7 = inlined_call_operand.vmem [shape: f32[8,4], index: 7, kind: output, shape index: {}]  }
   0x1   :  { %s24_s25 = sshll.u32 %s1596_s24, 4  ;;  %s1572_s28 = scalar_lea.hbm %s1812_s3, 8192  ;;  %s25_s25 = int_to_ptr.vmem [resolvable:$true] %s24_s25 }
   0x2   :  { %p1573_p0 = scmp.ne.s32.totalorder %s1812_s3, %s1572_s28  ;;  %p1576_p1 = scmp.lt.u32.totalorder %s1572_s28, %s1812_s3 }
   0x4   :  { %p1578_p2 = pnand %p1576_p1, %p1573_p0 }
   0x6   :  { %1581 = shalt.err (!%p1578_p2)
}
   0x7   :  { %s1582_s10 = scalar_lea.vmem %s25_s25, 8192  ;;  %p1587_p4 = scmp.lt.s32.totalorder %s25_s25, %s25_s25 }
   0x8   :  { %p1583_p3 = scmp.ne.s32.totalorder %s25_s25, %s1582_s10  ;;  %p1588_p5 = scmp.lt.s32.totalorder %s1582_s10, %s1582_s10 }
   0xa   :  { %p1589_p6 = por %p1588_p5, %p1587_p4 }
   0xc   :  { %p1590_p7 = pnand %p1589_p6, %p1583_p3 }
   0xe   :  { %1593 = shalt.err (!%p1590_p7)
}
   0xf   :  { %s1597_s11 = smov 64   ;;  %s1598_s12 = smov 4  }
  0x10   :  { %30 = dma.hbm_to_vmem [thread:$0]  %s1812_s3, 8192, %s25_s25, [#allocation3], %s1597_s11, %s1597_s11, %s1598_s12  }
  0x11   :  { %1594 = dma.done.wait [#allocation3], 8192  }
  0x12   :  { %1595 = vsyncadd [#allocation3], 4294959104  ;;  %v1599_v0 = vmov 0   ;;  %v1498_v1 = vld [vmem:[%s1810_s1 + $0x4] ss:$16 sps:$4 sm:$0xff]   ;;  %vm88_vm0 = vcmask 130048   ;;  %v48_v18 = vlaneseq }
  0x13   :  { %124 = vmatprep.mubr.bf16.mxu0 %v1599_v0  ;;  %165 = vmatprep.mubr.bf16.mxu1 %v1599_v0  ;;  %v1500_v2 = vld [vmem:[%s1810_s1] ss:$16 sps:$4 sm:$0xff]   ;;  %v1501_v4 = vld [vmem:[%s1810_s1 + $0xc] ss:$16 sps:$4 sm:$0xff]   ;;  %v1503_v5 = vld [vmem:[%s1810_s1 + $0x8] ss:$16 sps:$4 sm:$0xff]  }
  0x14   :  { %v41_v3 = vld [vmem:[%s1809_s0] sm:$0xf]  ;;  %92 = vmatprep.subr.bf16.mxu0 %v1498_v1  ;;  %v1504_v6 = vld [vmem:[#allocation2] sm:$0xff]   ;;  %133 = vmatprep.subr.bf16.mxu1 %v1501_v4  ;;  %v1600_v7 = vmov 0.0   ;;  %v1505_v8 = vld [vmem:[#allocation2 + $0x8] sm:$0xff]   ;;  %vm1601_vm1 = vmmov 0  }
  0x15   :  { %93 = vmatpush1.bf16.msra.mxu0 %v1500_v2  ;;  %134 = vmatpush1.bf16.msra.mxu1 %v1503_v5  ;;  %v1506_v9 = vld [vmem:[#allocation2 + $0x10] sm:$0xff]   ;;  %v1507_v10 = vld [vmem:[#allocation2 + $0x18] sm:$0xff]   ;;  %v1508_v11 = vld [vmem:[#allocation2 + $0x20] sm:$0xff]   ;;  %v1686_v20 = vshrl.u32 %v48_v18, 7  ;;  %vm1139_vm2 = vcmask 7168   ;;  %vm1141_vm3 = vcmask 15360  }
  0x16   :  { %1332 = vmatprep.subr.bf16.mxu0 %v1600_v7  ;;  %1352 = vmatprep.subr.bf16.mxu1 %v1600_v7  ;;  %v1509_v12 = vld [vmem:[#allocation2 + $0x28] sm:$0xff]   ;;  %v1510_v13 = vld [vmem:[#allocation2 + $0x30] sm:$0xff]   ;;  %v1511_v14 = vld [vmem:[#allocation2 + $0x38] sm:$0xff]   ;;  %vm1143_vm4 = vcmask 23552   ;;  %vm1159_vm5 = vcmask 31744  }
  0x17   :  { %v1536_v15 = vld [vmem:[#allocation2 + $0x40] sm:$0xff]   ;;  %v1537_v16 = vld [vmem:[#allocation2 + $0x48] sm:$0xff]   ;;  %v1538_v17 = vld [vmem:[#allocation2 + $0x50] sm:$0xff]   ;;  %v50_v22 = vsub.s32 0, %v1686_v20  ;;  %v54_v43 = vsub.s32 1, %v1686_v20  ;;  %v58_v55 = vsub.s32 2, %v1686_v20 }
  0x18   :  { %1170 = vmatmul.mubr.msk.bf16.vlgmr.msra.gmra.mrb[0].mxu0 %vm88_vm0, %v41_v3  ;;  %1171 = vmatmul.mubr.msk.bf16.vlgmr.msra.gmra.mrb[0].mxu1 %vm88_vm0, %v41_v3  ;;  %v1539_v19 = vld [vmem:[#allocation2 + $0x58] sm:$0xff]   ;;  %v1540_v21 = vld [vmem:[#allocation2 + $0x60] sm:$0xff]   ;;  %v1541_v23 = vld [vmem:[#allocation2 + $0x68] sm:$0xff]   ;;  %v62_v5 = vsub.s32 3, %v1686_v20 }
  0x19   :  { %1333 = vmatpush3.bf16.msra.mxu0 %v1504_v6  ;;  %1348 = vmatprep.mubr.msk.bf16.mxu0 %vm1601_vm1, %v1600_v7  ;;  %v1693_v24 = vld [vmem:[%s1811_s2] sm:$0xf]  ;;  %v1542_v26 = vld [vmem:[#allocation2 + $0x70] sm:$0xff]   ;;  %v1512_v35 = vld [vmem:[#allocation2 + $0x80] sm:$0xff]  }
  0x1a   :  { %1334 = vmatprep.subr.bf16.mxu0 %v1600_v7  ;;  %1368 = vmatprep.mubr.msk.bf16.mxu1 %vm1601_vm1, %v1600_v7  ;;  %v51_v25 = vrot.slane %v1693_v24, %v50_v22  ;;  %v1513_v39 = vld [vmem:[#allocation2 + $0x88] sm:$0xff]   ;;  %v1514_v40 = vld [vmem:[#allocation2 + $0x90] sm:$0xff]   ;;  %v1515_v41 = vld [vmem:[#allocation2 + $0x98] sm:$0xff]   ;;  %v55_v45 = vrot.slane %v1693_v24, %v54_v43  ;;  %v59_v57 = vrot.slane %v1693_v24, %v58_v55 }
  0x1b   :  { %1353 = vmatpush3.bf16.msra.mxu1 %v1536_v15  ;;  %v1516_v42 = vld [vmem:[#allocation2 + $0xa0] sm:$0xff]   ;;  %v1517_v44 = vld [vmem:[#allocation2 + $0xa8] sm:$0xff]   ;;  %v1518_v46 = vld [vmem:[#allocation2 + $0xb0] sm:$0xff]  }
  0x1c   :  { %1354 = vmatprep.subr.bf16.mxu1 %v1600_v7  ;;  %v1519_v48 = vld [vmem:[#allocation2 + $0xb8] sm:$0xff]   ;;  %v1520_v50 = vld [vmem:[#allocation2 + $0x100] sm:$0xff]   ;;  %v1521_v52 = vld [vmem:[#allocation2 + $0x108] sm:$0xff]  }
  0x1d   :  { %1335 = vmatpush3.bf16.msra.mxu0 %v1505_v8  ;;  %v1522_v53 = vld [vmem:[#allocation2 + $0x110] sm:$0xff]   ;;  %v1523_v54 = vld [vmem:[#allocation2 + $0x118] sm:$0xff]   ;;  %v1524_v56 = vld [vmem:[#allocation2 + $0x120] sm:$0xff]   ;;  %v63_v8 = vrot.slane %v1693_v24, %v62_v5 }
  0x1e   :  { %1336 = vmatprep.subr.bf16.mxu0 %v1600_v7  ;;  %v1525_v58 = vld [vmem:[#allocation2 + $0x128] sm:$0xff]   ;;  %v1526_v60 = vld [vmem:[#allocation2 + $0x130] sm:$0xff]   ;;  %v1527_v62 = vld [vmem:[#allocation2 + $0x138] sm:$0xff]  }
  0x1f   :  { %1355 = vmatpush3.bf16.msra.mxu1 %v1537_v16  ;;  %v1528_v0 = vld [vmem:[#allocation2 + $0x180] sm:$0xff]   ;;  %v1529_v1 = vld [vmem:[#allocation2 + $0x188] sm:$0xff]   ;;  %v1530_v2 = vld [vmem:[#allocation2 + $0x190] sm:$0xff]  }
  0x20   :  { %1356 = vmatprep.subr.bf16.mxu1 %v1600_v7  ;;  %v1531_v3 = vld [vmem:[#allocation2 + $0x198] sm:$0xff]   ;;  %v1532_v4 = vld [vmem:[#allocation2 + $0x1a0] sm:$0xff]   ;;  %v1533_v6 = vld [vmem:[#allocation2 + $0x1a8] sm:$0xff]  }
  0x21   :  { %1337 = vmatpush3.bf16.msra.mxu0 %v1506_v9  ;;  %v1534_v9 = vld [vmem:[#allocation2 + $0x1b0] sm:$0xff]   ;;  %v1172_v15 = vld [vmem:[%s1813_s4] ss:$0 sm:$0xff]  ;;  %v1544_v22 = vld [vmem:[#allocation2 + $0xc0] sm:$0xff]  }
  0x22   :  { %1338 = vmatprep.subr.bf16.mxu0 %v1600_v7  ;;  %v1545_v24 = vld [vmem:[#allocation2 + $0xc8] sm:$0xff]   ;;  %v1556_v43 = vld [vmem:[#allocation2 + $0x160] sm:$0xff]  }
  0x23   :  { %1357 = vmatpush3.bf16.msra.mxu1 %v1538_v17 }
  0x24   :  { %1358 = vmatprep.subr.bf16.mxu1 %v1600_v7 }
  0x25   :  { %1339 = vmatpush3.bf16.msra.mxu0 %v1507_v10  ;;  %v1543_v10 = vld [vmem:[#allocation2 + $0x78] sm:$0xff]  }
  0x26   :  { %1340 = vmatprep.subr.bf16.mxu0 %v1600_v7 }
  0x27   :  { %1359 = vmatpush3.bf16.msra.mxu1 %v1539_v19 }
  0x28   :  { %1360 = vmatprep.subr.bf16.mxu1 %v1600_v7 }
  0x29   :  { %1341 = vmatpush3.bf16.msra.mxu0 %v1508_v11 }
  0x2a   :  { %1342 = vmatprep.subr.bf16.mxu0 %v1600_v7 }
  0x2b   :  { %1361 = vmatpush3.bf16.msra.mxu1 %v1540_v21 }
  0x2c   :  { %1362 = vmatprep.subr.bf16.mxu1 %v1600_v7 }
  0x2d   :  { %1343 = vmatpush3.bf16.msra.mxu0 %v1509_v12  ;;  %v1535_v12 = vld [vmem:[#allocation2 + $0x1b8] sm:$0xff]  }
  0x2e   :  { %1344 = vmatprep.subr.bf16.mxu0 %v1600_v7 }
  0x2f   :  { %1363 = vmatpush3.bf16.msra.mxu1 %v1541_v23 }
  0x30   :  { %1364 = vmatprep.subr.bf16.mxu1 %v1600_v7 }
  0x31   :  { %1345 = vmatpush3.bf16.msra.mxu0 %v1510_v13 }
  0x32   :  { %1346 = vmatprep.subr.bf16.mxu0 %v1600_v7 }
  0x33   :  { %1365 = vmatpush3.bf16.msra.mxu1 %v1542_v26  ;;  %v1547_v26 = vld [vmem:[#allocation2 + $0xd8] sm:$0xff]  }
  0x34   :  { %1366 = vmatprep.subr.bf16.mxu1 %v1600_v7 }
  0x35   :  { %1347 = vmatpush3.bf16.msra.mxu0 %v1511_v14 }
  0x36   :  { %1372 = vmatprep.subr.bf16.mxu0 %v1600_v7 }
  0x37   :  { %1367 = vmatpush3.bf16.msra.mxu1 %v1543_v10 }
  0x38   :  { %1392 = vmatprep.subr.bf16.mxu1 %v1600_v7 }
  0xeb   :  { %v126_v27 = vpop.f32.mrb[0].mxu0  ;;  %v167_v31 = vpop.f32.mrb[0].mxu1 }
  0xec   :  { %v127_v28 = vadd.f32 %v126_v27, %v51_v25  ;;  %v128_v29 = vpop.f32.mrb[1].mxu0  ;;  %v1699_v34 = vpop.f32.mrb[1].mxu1  ;;  %v168_v59 = vadd.f32 %v167_v31, %v59_v57  ;;  %v1546_v25 = vld [vmem:[#allocation2 + $0xd0] sm:$0xff]   ;;  %v1548_v27 = vld [vmem:[#allocation2 + $0xe0] sm:$0xff]  }
  0xed   :  { %v130_v30 = vpop.f32.mrb[2].mxu0  ;;  %v171_v36 = vpop.f32.mrb[2].mxu1  ;;  %v129_v47 = vadd.f32 %v128_v29, %v55_v45  ;;  %v170_v11 = vadd.f32 %v1699_v34, %v63_v8  ;;  %v1550_v29 = vld [vmem:[#allocation2 + $0xf0] sm:$0xff]   ;;  %v1182_v8 = vld [vmem:[%s1813_s4 + $0x1] ss:$0 sm:$0xff] }
  0xee   :  { %v174_v32 = vmax.f32 %v127_v28, 0.0  ;;  %v131_v33 = vpop.f32.mrb[3].mxu0  ;;  %v172_v38 = vpop.f32.mrb[3].mxu1  ;;  %v176_v61 = vmax.f32 %v168_v59, 0.0  ;;  %v1549_v28 = vld [vmem:[#allocation2 + $0xe8] sm:$0xff]   ;;  %v1558_v45 = vld [vmem:[#allocation2 + $0x170] sm:$0xff]  }
  0xef   :  { %v175_v49 = vmax.f32 %v129_v47, 0.0  ;;  %v177_v13 = vmax.f32 %v170_v11, 0.0  ;;  %v1193_v30 = vld [vmem:[%s1813_s4 + $0x2] ss:$0 sm:$0xff]  ;;  %v1552_v38 = vld [vmem:[#allocation2 + $0x140] sm:$0xff]   ;;  %v1562_v57 = vld [vmem:[#allocation2 + $0x1d0] sm:$0xff]  }
  0xf0   :  { %v178_v37 = vpack.c.bf16 %v174_v32, %v174_v32  ;;  %v657_v63 = vpack.c.bf16 %v176_v61, %v176_v61  ;;  %v1551_v32 = vld [vmem:[#allocation2 + $0xf8] sm:$0xff]   ;;  %v1564_v59 = vld [vmem:[#allocation2 + $0x1e0] sm:$0xff]   ;;  %v1566_v61 = vld [vmem:[#allocation2 + $0x1f0] sm:$0xff]  }
  0xf1   :  { %v416_v51 = vpack.c.bf16 %v175_v49, %v175_v49  ;;  %v898_v14 = vpack.c.bf16 %v177_v13, %v177_v13  ;;  %v1191_v13 = vld [vmem:[%s1814_s5] ss:$0 sm:$0xff] }
  0xf2   :  { %1349 = vmatmul.mubr.bf16.vlgmr.msra.gmra.mrb[4].mxu0 %v178_v37 }
  0xf3   :  { %1373 = vmatpush3.bf16.msra.mxu0 %v1512_v35  ;;  %1388 = vmatprep.mubr.msk.bf16.mxu0 %vm1601_vm1, %v1600_v7 }
  0xf4   :  { %1374 = vmatprep.subr.bf16.mxu0 %v1600_v7 }
  0xf7   :  { %1375 = vmatpush3.bf16.msra.mxu0 %v1513_v39 }
  0xf8   :  { %1376 = vmatprep.subr.bf16.mxu0 %v1600_v7 }
  0xfb   :  { %1377 = vmatpush3.bf16.msra.mxu0 %v1514_v40  ;;  %v1553_v40 = vld [vmem:[#allocation2 + $0x148] sm:$0xff]  }
  0xfc   :  { %1378 = vmatprep.subr.bf16.mxu0 %v1600_v7 }
  0xff   :  { %1379 = vmatpush3.bf16.msra.mxu0 %v1515_v41  ;;  %v1554_v41 = vld [vmem:[#allocation2 + $0x150] sm:$0xff]  }
 0x100   :  { %1380 = vmatprep.subr.bf16.mxu0 %v1600_v7 }
 0x103   :  { %1381 = vmatpush3.bf16.msra.mxu0 %v1516_v42  ;;  %v1555_v42 = vld [vmem:[#allocation2 + $0x158] sm:$0xff]  }
 0x104   :  { %1382 = vmatprep.subr.bf16.mxu0 %v1600_v7 }
 0x107   :  { %1383 = vmatpush3.bf16.msra.mxu0 %v1517_v44  ;;  %v1557_v44 = vld [vmem:[#allocation2 + $0x168] sm:$0xff]  }
 0x108   :  { %1384 = vmatprep.subr.bf16.mxu0 %v1600_v7 }
 0x10b   :  { %1385 = vmatpush3.bf16.msra.mxu0 %v1518_v46  ;;  %v1215_v46 = vld [vmem:[%s1813_s4 + $0x4] ss:$0 sm:$0xff] }
 0x10c   :  { %1386 = vmatprep.subr.bf16.mxu0 %v1600_v7 }
 0x10f   :  { %1387 = vmatpush3.bf16.msra.mxu0 %v1519_v48  ;;  %v1559_v48 = vld [vmem:[#allocation2 + $0x178] sm:$0xff]  }
 0x110   :  { %1412 = vmatprep.subr.bf16.mxu0 %v1600_v7 }
 0x112   :  { %1389 = vmatmul.mubr.bf16.vlgmr.msra.gmra.mrb[8].mxu0 %v416_v51 }
 0x113   :  { %1413 = vmatpush3.bf16.msra.mxu0 %v1520_v50  ;;  %1428 = vmatprep.mubr.msk.bf16.mxu0 %vm1601_vm1, %v1600_v7 }
 0x114   :  { %1414 = vmatprep.subr.bf16.mxu0 %v1600_v7 }
 0x117   :  { %1415 = vmatpush3.bf16.msra.mxu0 %v1521_v52 }
 0x118   :  { %1416 = vmatprep.subr.bf16.mxu0 %v1600_v7 }
 0x11b   :  { %1417 = vmatpush3.bf16.msra.mxu0 %v1522_v53 }
 0x11c   :  { %1418 = vmatprep.subr.bf16.mxu0 %v1600_v7 }
 0x11f   :  { %1419 = vmatpush3.bf16.msra.mxu0 %v1523_v54  ;;  %v1560_v54 = vld [vmem:[#allocation2 + $0x1c0] sm:$0xff]  }
 0x120   :  { %1420 = vmatprep.subr.bf16.mxu0 %v1600_v7 }
 0x123   :  { %1421 = vmatpush3.bf16.msra.mxu0 %v1524_v56  ;;  %v1561_v56 = vld [vmem:[#allocation2 + $0x1c8] sm:$0xff]  }
 0x124   :  { %1422 = vmatprep.subr.bf16.mxu0 %v1600_v7 }
 0x127   :  { %1423 = vmatpush3.bf16.msra.mxu0 %v1525_v58  ;;  %v1563_v58 = vld [vmem:[#allocation2 + $0x1d8] sm:$0xff]  }
 0x128   :  { %1424 = vmatprep.subr.bf16.mxu0 %v1600_v7 }
 0x12b   :  { %1425 = vmatpush3.bf16.msra.mxu0 %v1526_v60  ;;  %v1565_v60 = vld [vmem:[#allocation2 + $0x1e8] sm:$0xff]  }
 0x12c   :  { %1426 = vmatprep.subr.bf16.mxu0 %v1600_v7 }
 0x12f   :  { %1427 = vmatpush3.bf16.msra.mxu0 %v1527_v62  ;;  %v1237_v62 = vld [vmem:[%s1813_s4 + $0x6] ss:$0 sm:$0xff] }
 0x130   :  { %1452 = vmatprep.subr.bf16.mxu0 %v1600_v7 }
 0x132   :  { %1429 = vmatmul.mubr.bf16.vlgmr.msra.gmra.mrb[12].mxu0 %v657_v63 }
 0x133   :  { %1453 = vmatpush3.bf16.msra.mxu0 %v1528_v0  ;;  %1468 = vmatprep.mubr.msk.bf16.mxu0 %vm1601_vm1, %v1600_v7  ;;  %v1567_v0 = vld [vmem:[#allocation2 + $0x1f8] sm:$0xff]  }
 0x134   :  { %1454 = vmatprep.subr.bf16.mxu0 %v1600_v7 }
 0x137   :  { %1455 = vmatpush3.bf16.msra.mxu0 %v1529_v1 }
 0x138   :  { %1456 = vmatprep.subr.bf16.mxu0 %v1600_v7 }
 0x13b   :  { %1457 = vmatpush3.bf16.msra.mxu0 %v1530_v2 }
 0x13c   :  { %1458 = vmatprep.subr.bf16.mxu0 %v1600_v7 }
 0x13f   :  { %1459 = vmatpush3.bf16.msra.mxu0 %v1531_v3 }
 0x140   :  { %1460 = vmatprep.subr.bf16.mxu0 %v1600_v7 }
 0x143   :  { %1461 = vmatpush3.bf16.msra.mxu0 %v1532_v4 }
 0x144   :  { %1462 = vmatprep.subr.bf16.mxu0 %v1600_v7 }
 0x147   :  { %1463 = vmatpush3.bf16.msra.mxu0 %v1533_v6 }
 0x148   :  { %1464 = vmatprep.subr.bf16.mxu0 %v1600_v7 }
 0x14b   :  { %1465 = vmatpush3.bf16.msra.mxu0 %v1534_v9 }
 0x14c   :  { %1466 = vmatprep.subr.bf16.mxu0 %v1600_v7 }
 0x14f   :  { %1467 = vmatpush3.bf16.msra.mxu0 %v1535_v12 }
 0x152   :  { %1469 = vmatmul.mubr.bf16.vlgmr.msra.gmra.mrb[16].mxu0 %v898_v14 }
 0x1c5   :  { %v284_v16 = vpop.f32.mrb[4].mxu0 }
 0x1c6   :  { %v285_v17 = vadd.f32 %v1172_v15, %v284_v16  ;;  %v1350_v18 = vpop.f32.mrb[5].mxu0  ;;  %v1203_v16 = vld [vmem:[%s1813_s4 + $0x3] ss:$0 sm:$0xff] }
 0x1c7   :  { %v287_v19 = vpop.f32.mrb[6].mxu0 }
 0x1c8   :  { %v290_v20 = vmax.f32 %v285_v17, 0.0  ;;  %v1351_v21 = vpop.f32.mrb[7].mxu0 }
 0x1c9   :  { %v1213_v21 = vld [vmem:[%s1814_s5 + $0x1] ss:$0 sm:$0xff] }
 0x1ca   :  { %v291_v23 = vpack.c.bf16 %v290_v20, %v290_v20 }
 0x1cc   :  { %1369 = vmatmul.mubr.bf16.vlgmr.msra.gmra.mrb[4].mxu1 %v291_v23 }
 0x1cd   :  { %1393 = vmatpush3.bf16.msra.mxu1 %v1544_v22  ;;  %1408 = vmatprep.mubr.msk.bf16.mxu1 %vm1601_vm1, %v1600_v7 }
 0x1ce   :  { %1394 = vmatprep.subr.bf16.mxu1 %v1600_v7 }
 0x1d1   :  { %1395 = vmatpush3.bf16.msra.mxu1 %v1545_v24 }
 0x1d2   :  { %1396 = vmatprep.subr.bf16.mxu1 %v1600_v7 }
 0x1d5   :  { %1397 = vmatpush3.bf16.msra.mxu1 %v1546_v25  ;;  %v1225_v25 = vld [vmem:[%s1813_s4 + $0x5] ss:$0 sm:$0xff] }
 0x1d6   :  { %1398 = vmatprep.subr.bf16.mxu1 %v1600_v7 }
 0x1d9   :  { %1399 = vmatpush3.bf16.msra.mxu1 %v1547_v26 }
 0x1da   :  { %1400 = vmatprep.subr.bf16.mxu1 %v1600_v7 }
 0x1dd   :  { %1401 = vmatpush3.bf16.msra.mxu1 %v1548_v27 }
 0x1de   :  { %1402 = vmatprep.subr.bf16.mxu1 %v1600_v7 }
 0x1e1   :  { %1403 = vmatpush3.bf16.msra.mxu1 %v1549_v28 }
 0x1e2   :  { %1404 = vmatprep.subr.bf16.mxu1 %v1600_v7 }
 0x1e5   :  { %v524_v31 = vpop.f32.mrb[8].mxu0  ;;  %1405 = vmatpush3.bf16.msra.mxu1 %v1550_v29 }
 0x1e6   :  { %v525_v33 = vadd.f32 %v1193_v30, %v524_v31  ;;  %v1390_v34 = vpop.f32.mrb[9].mxu0  ;;  %1406 = vmatprep.subr.bf16.mxu1 %v1600_v7  ;;  %v1235_v30 = vld [vmem:[%s1814_s5 + $0x2] ss:$0 sm:$0xff] }
 0x1e7   :  { %v527_v35 = vpop.f32.mrb[10].mxu0  ;;  %v1247_v34 = vld [vmem:[%s1813_s4 + $0x7] ss:$0 sm:$0xff] }
 0x1e8   :  { %v530_v36 = vmax.f32 %v525_v33, 0.0  ;;  %v1391_v37 = vpop.f32.mrb[11].mxu0 }
 0x1e9   :  { %1407 = vmatpush3.bf16.msra.mxu1 %v1551_v32 }
 0x1ea   :  { %v531_v39 = vpack.c.bf16 %v530_v36, %v530_v36  ;;  %1432 = vmatprep.subr.bf16.mxu1 %v1600_v7 }
 0x1ec   :  { %1409 = vmatmul.mubr.bf16.vlgmr.msra.gmra.mrb[8].mxu1 %v531_v39  ;;  %v1257_v39 = vld [vmem:[%s1814_s5 + $0x3] ss:$0 sm:$0xff] }
 0x1ed   :  { %1433 = vmatpush3.bf16.msra.mxu1 %v1552_v38  ;;  %1448 = vmatprep.mubr.msk.bf16.mxu1 %vm1601_vm1, %v1600_v7 }
 0x1ee   :  { %1434 = vmatprep.subr.bf16.mxu1 %v1600_v7 }
 0x1f1   :  { %1435 = vmatpush3.bf16.msra.mxu1 %v1553_v40 }
 0x1f2   :  { %1436 = vmatprep.subr.bf16.mxu1 %v1600_v7 }
 0x1f5   :  { %1437 = vmatpush3.bf16.msra.mxu1 %v1554_v41 }
 0x1f6   :  { %1438 = vmatprep.subr.bf16.mxu1 %v1600_v7 }
 0x1f9   :  { %1439 = vmatpush3.bf16.msra.mxu1 %v1555_v42 }
 0x1fa   :  { %1440 = vmatprep.subr.bf16.mxu1 %v1600_v7 }
 0x1fd   :  { %1441 = vmatpush3.bf16.msra.mxu1 %v1556_v43 }
 0x1fe   :  { %1442 = vmatprep.subr.bf16.mxu1 %v1600_v7 }
 0x201   :  { %1443 = vmatpush3.bf16.msra.mxu1 %v1557_v44 }
 0x202   :  { %1444 = vmatprep.subr.bf16.mxu1 %v1600_v7 }
 0x205   :  { %v765_v47 = vpop.f32.mrb[12].mxu0  ;;  %1445 = vmatpush3.bf16.msra.mxu1 %v1558_v45 }
 0x206   :  { %v766_v49 = vadd.f32 %v1215_v46, %v765_v47  ;;  %v1430_v50 = vpop.f32.mrb[13].mxu0  ;;  %1446 = vmatprep.subr.bf16.mxu1 %v1600_v7  ;;  %v1258_v47 = vld [vmem:[%s1815_s6] ss:$0 sm:$0xff] }
 0x207   :  { %v768_v51 = vpop.f32.mrb[14].mxu0 }
 0x208   :  { %v771_v52 = vmax.f32 %v766_v49, 0.0  ;;  %v1431_v53 = vpop.f32.mrb[15].mxu0 }
 0x209   :  { %1447 = vmatpush3.bf16.msra.mxu1 %v1559_v48 }
 0x20a   :  { %v772_v55 = vpack.c.bf16 %v771_v52, %v771_v52  ;;  %1472 = vmatprep.subr.bf16.mxu1 %v1600_v7 }
 0x20c   :  { %1449 = vmatmul.mubr.bf16.vlgmr.msra.gmra.mrb[12].mxu1 %v772_v55 }
 0x20d   :  { %1473 = vmatpush3.bf16.msra.mxu1 %v1560_v54  ;;  %1488 = vmatprep.mubr.msk.bf16.mxu1 %vm1601_vm1, %v1600_v7 }
 0x20e   :  { %1474 = vmatprep.subr.bf16.mxu1 %v1600_v7 }
 0x211   :  { %1475 = vmatpush3.bf16.msra.mxu1 %v1561_v56 }
 0x212   :  { %1476 = vmatprep.subr.bf16.mxu1 %v1600_v7 }
 0x215   :  { %1477 = vmatpush3.bf16.msra.mxu1 %v1562_v57 }
 0x216   :  { %1478 = vmatprep.subr.bf16.mxu1 %v1600_v7 }
 0x219   :  { %1479 = vmatpush3.bf16.msra.mxu1 %v1563_v58 }
 0x21a   :  { %1480 = vmatprep.subr.bf16.mxu1 %v1600_v7 }
 0x21d   :  { %1481 = vmatpush3.bf16.msra.mxu1 %v1564_v59 }
 0x21e   :  { %1482 = vmatprep.subr.bf16.mxu1 %v1600_v7 }
 0x221   :  { %1483 = vmatpush3.bf16.msra.mxu1 %v1565_v60 }
 0x222   :  { %1484 = vmatprep.subr.bf16.mxu1 %v1600_v7 }
 0x225   :  { %v1006_v63 = vpop.f32.mrb[16].mxu0  ;;  %1485 = vmatpush3.bf16.msra.mxu1 %v1566_v61 }
 0x226   :  { %v1007_v1 = vadd.f32 %v1237_v62, %v1006_v63  ;;  %v1470_v2 = vpop.f32.mrb[17].mxu0  ;;  %1486 = vmatprep.subr.bf16.mxu1 %v1600_v7 }
 0x227   :  { %v1009_v3 = vpop.f32.mrb[18].mxu0 }
 0x228   :  { %v1012_v4 = vmax.f32 %v1007_v1, 0.0  ;;  %v1471_v5 = vpop.f32.mrb[19].mxu0 }
 0x229   :  { %1487 = vmatpush3.bf16.msra.mxu1 %v1567_v0 }
 0x22a   :  { %v1013_v6 = vpack.c.bf16 %v1012_v4, %v1012_v4 }
 0x22c   :  { %1489 = vmatmul.mubr.bf16.vlgmr.msra.gmra.mrb[16].mxu1 %v1013_v6 }
 0x29f   :  { %v399_v9 = vpop.f32.mrb[4].mxu1 }
 0x2a0   :  { %v400_v10 = vadd.f32 %v1182_v8, %v399_v9  ;;  %v1370_v11 = vpop.f32.mrb[5].mxu1 }
 0x2a1   :  { %v402_v12 = vpop.f32.mrb[6].mxu1 }
 0x2a2   :  { %v405_v14 = vmax.f32 %v400_v10, 0.0  ;;  %v1371_v7 = vpop.f32.mrb[7].mxu1 }
 0x2a4   :  { %v413_v15 = vmul.f32 %v1191_v13, %v405_v14 }
 0x2a6   :  { %414 = vadd.xlane.f32.xlu0 %v413_v15 }
 0x2bf   :  { %v639_v17 = vpop.f32.mrb[8].mxu1 }
 0x2c0   :  { %v640_v18 = vadd.f32 %v1203_v16, %v639_v17  ;;  %v1410_v19 = vpop.f32.mrb[9].mxu1 }
 0x2c1   :  { %v642_v20 = vpop.f32.mrb[10].mxu1 }
 0x2c2   :  { %v645_v22 = vmax.f32 %v640_v18, 0.0  ;;  %v1411_v23 = vpop.f32.mrb[11].mxu1 }
 0x2c4   :  { %v654_v24 = vmul.f32 %v1213_v21, %v645_v22 }
 0x2c6   :  { %655 = vadd.xlane.f32.xlu0 %v654_v24 }
 0x2df   :  { %v880_v26 = vpop.f32.mrb[12].mxu1 }
 0x2e0   :  { %v881_v27 = vadd.f32 %v1225_v25, %v880_v26  ;;  %v1450_v28 = vpop.f32.mrb[13].mxu1 }
 0x2e1   :  { %v883_v29 = vpop.f32.mrb[14].mxu1 }
 0x2e2   :  { %v886_v31 = vmax.f32 %v881_v27, 0.0  ;;  %v1451_v32 = vpop.f32.mrb[15].mxu1 }
 0x2e4   :  { %v895_v33 = vmul.f32 %v1235_v30, %v886_v31 }
 0x2e6   :  { %896 = vadd.xlane.f32.xlu1 %v895_v33 }
 0x2ff   :  { %v1121_v35 = vpop.f32.mrb[16].mxu1 }
 0x300   :  { %v1122_v36 = vadd.f32 %v1247_v34, %v1121_v35  ;;  %v1490_v37 = vpop.f32.mrb[17].mxu1 }
 0x301   :  { %v1124_v38 = vpop.f32.mrb[18].mxu1 }
 0x302   :  { %v1127_v40 = vmax.f32 %v1122_v36, 0.0  ;;  %v1491_v41 = vpop.f32.mrb[19].mxu1 }
 0x304   :  { %v1136_v42 = vmul.f32 %v1257_v39, %v1127_v40 }
 0x306   :  { %1137 = vadd.xlane.f32.xlu1 %v1136_v42 }
 0x333   :  { %v415_v43 = vpop.xlane.xlu0 %414 }
 0x353   :  { %v656_v44 = vpop.xlane.xlu0 %655 }
 0x354   :  { %v1140_v46 = vsel %vm1139_vm2, %v415_v43, %v656_v44 }
 0x373   :  { %v897_v45 = vpop.xlane.xlu1 %896 }
 0x374   :  { %v1142_v48 = vsel %vm1141_vm3, %v1140_v46, %v897_v45 }
 0x393   :  { %v1138_v49 = vpop.xlane.xlu1 %1137 }
 0x394   :  { %v1144_v50 = vsel %vm1143_vm4, %v1142_v48, %v1138_v49 }
 0x395   :  { %v1152_v51 = vadd.f32 %v1258_v47, %v1144_v50 }
 0x397   :  { %v1259_v52 = vmul.f32 -1.442695, %v1152_v51 }
 0x399   :  { %1568 = vpow2.f32 %v1259_v52 }
 0x3a3   :  { %v1569_v53 = vpop.eup %1568 }
 0x3a4   :  { %v1156_v54 = vadd.f32 1.0, %v1569_v53 }
 0x3a6   :  { %1570 = vrcp.f32 %v1156_v54 }
 0x3b0   :  { %v1571_v55 = vpop.eup %1570 }
 0x3b1   :  { %1160 = vst.msk [vmem:[%s1816_s7] sm:$0xff] %vm1159_vm5, %v1571_v55 }
 0x3b2   :  { %1165 = vsyncpa [#allocation3], 1 }

</bundles_post_ra>
